<compile_context>
chip_gen: v5e
topology: v5e:2x2
jax: 0.10.0
libtpu: 0.0.40
codegen_flags: <defaults>
</compile_context>

<pallas_src>
import functools

import jax
import jax.numpy as jnp
from jax.experimental import pallas as pl
from jax.experimental.pallas import tpu as pltpu


# ---------------------------------------------------------------------------
# Fused kernel: expand(1x1)+tanh -> depthwise 3x3 s2 valid + tanh -> project(1x1)
# ---------------------------------------------------------------------------
def _fused_kernel(*refs, th, apply_expand):
    if apply_expand:
        xp_ref, w1_ref, wdw_ref, wpw_ref, o_ref, mid_scr = refs
    else:
        xp_ref, wdw_ref, wpw_ref, o_ref, mid_scr = refs
        w1_ref = None

    t = pl.program_id(1)                       # output-row tile index
    _, _, _, W2, Cin = xp_ref.shape            # block: (1, 4, H2, W2, Cin)
    Cmid = wdw_ref.shape[-1]
    row0 = t * th                              # first output row of this tile

    # Halo window of the VMEM-resident parity input: parity rows [row0, row0 + th].
    xw = xp_ref[0, :, pl.ds(row0, th + 1), :, :]          # (4, th+1, W2, Cin)

    # ---- stage 1: 1x1 expansion + tanh — one batched MXU matmul over all planes ----
    if apply_expand:
        x2d = xw.reshape(4 * (th + 1) * W2, Cin)
        mid = jnp.dot(x2d.astype(jnp.bfloat16), w1_ref[...],   # w1 pre-cast to bf16
                      preferred_element_type=jnp.float32)
        mid = jnp.tanh(mid).reshape(4, th + 1, W2, Cmid)
    else:
        mid = xw.astype(jnp.float32)

    # Park the expanded activations in VMEM scratch (width padded by one column) so
    # the stride-2 column taps become plain shifted sublane reads.
    mid_scr[:, :, W2:, :] = jnp.zeros((4, th + 1, 1, Cmid), jnp.float32)
    mid_scr[:, :, :W2, :] = mid

    # ---- stage 2: depthwise 3x3 / stride 2 / valid — all th output rows at once ----
    w_dw = wdw_ref[...]                                    # (3, 3, Cmid), f32
    acc = jnp.zeros((th, W2, Cmid), jnp.float32)           # col W2-1 is padding
    for kh in range(3):
        p, dh = kh % 2, kh // 2        # input row 2*ho+kh -> parity p, row offset dh
        for kw in range(3):
            q, dwc = kw % 2, kw // 2   # input col 2*wo+kw -> parity q, col offset dwc
            opnd = mid_scr[2 * p + q, dh:dh + th, dwc:dwc + W2, :]   # (th, W2, Cmid)
            acc = acc + opnd * w_dw[kh:kh + 1, kw:kw + 1, :]

    # ---- stage 3: tanh + 1x1 projection (one matmul), one dense store ----
    a2d = jnp.tanh(acc).reshape(th * W2, Cmid)
    y = jnp.dot(a2d.astype(jnp.bfloat16), wpw_ref[...],    # wpw pre-cast to bf16
                preferred_element_type=jnp.float32)        # (th*W2, Cout)
    o_ref[0, :, :] = y.astype(o_ref.dtype)


def net_for_stride_two(x_nchw, params, expansion, *, row_tile_target=8):
    """Forward pass of NetForStrideTwo.  x_nchw: (N, Cin, H, W) like the torch module."""
    x = jnp.transpose(x_nchw, (0, 2, 3, 1)).astype(jnp.float32)   # NCHW -> NHWC
    N, H, W, Cin = x.shape
    assert H % 2 == 0 and W % 2 == 0, "parity split requires even spatial dims"
    # TODO(synk): odd H/W inputs (still valid for the torch conv) need a halo-pad path.
    H2, W2 = H // 2, W // 2
    Hout, Wout = H2 - 1, W2 - 1                                   # (H-3)//2 + 1 for even H

    apply_expand = expansion != 1
    wdw = params["wdw"].astype(jnp.float32)                       # VPU taps stay f32
    wpw = params["wpw"].astype(jnp.bfloat16)                      # MXU input
    Cmid, Cout = wdw.shape[-1], params["wpw"].shape[-1]

    # even/odd (H, W) parity planes of the PRE-expansion input: xp[n, 2a+b, h2, w2, c]
    xp = jnp.transpose(x.reshape(N, H2, 2, W2, 2, Cin), (0, 2, 4, 1, 3, 5))
    xp = xp.reshape(N, 4, H2, W2, Cin)

    # Output-row tile: largest divisor of Hout <= target; fall back to the whole image
    # if that degenerates (prime Hout) or would break (8,128) store alignment.
    # TODO(synk): cdiv-based tiling with a BoundedSlice tail for large awkward Hout.
    Th = max(d for d in range(1, min(Hout, row_tile_target) + 1) if Hout % d == 0)
    if Th < max(1, row_tile_target // 2) or (Th != Hout and (Th * W2) % 8 != 0):
        Th = Hout
    T = Hout // Th

    kernel = functools.partial(_fused_kernel, th=Th, apply_expand=apply_expand)

    # Whole per-batch parity input stays VMEM-resident across t (auto-pipelined over n).
    in_specs = [pl.BlockSpec((1, 4, H2, W2, Cin), lambda n, t: (n, 0, 0, 0, 0))]
    args = [xp]
    if apply_expand:
        w1 = params["w1"].astype(jnp.bfloat16)                    # MXU input
        in_specs.append(pl.BlockSpec(w1.shape, lambda n, t: (0, 0)))
        args.append(w1)
    in_specs += [pl.BlockSpec((3, 3, Cmid), lambda n, t: (0, 0, 0)),
                 pl.BlockSpec((Cmid, Cout), lambda n, t: (0, 0))]
    args += [wdw, wpw]

    out_p = pl.pallas_call(
        kernel,
        out_shape=jax.ShapeDtypeStruct((N, Hout * W2, Cout), jnp.float32),
        grid=(N, T),
        in_specs=in_specs,
        out_specs=pl.BlockSpec((1, Th * W2, Cout), lambda n, t: (n, t, 0)),
        scratch_shapes=[pltpu.VMEM((4, Th + 1, W2 + 1, Cmid), jnp.float32)],
        compiler_params=pltpu.CompilerParams(
            dimension_semantics=("parallel", "parallel")),
    )(*args)

    out = out_p.reshape(N, Hout, W2, Cout)[:, :, :Wout, :]        # drop width pad column
    return jnp.transpose(out, (0, 3, 1, 2))                       # NHWC -> NCHW


def init_params(key, in_fts, out_fts, expansion):
    cmid = expansion * in_fts
    k1, k2, k3 = jax.random.split(key, 3)
    # torch weight (Cmid, Cin, 1, 1) -> stored as (Cin, Cmid); (Cmid, 1, 3, 3) -> (3, 3, Cmid)
    w1 = jax.random.normal(k1, (in_fts, cmid), jnp.float32) / jnp.sqrt(in_fts)
    wdw = jax.random.normal(k2, (3, 3, cmid), jnp.float32) / 3.0
    wpw = jax.random.normal(k3, (cmid, out_fts), jnp.float32) / jnp.sqrt(cmid)
    return {"w1": w1, "wdw": wdw, "wpw": wpw}


# ---------------------------------------------------------------------------
# Pure-JAX reference (mirrors the PyTorch forward) for correctness checking
# ---------------------------------------------------------------------------
def ref_forward(x_nchw, params, expansion):
    x = jnp.transpose(x_nchw, (0, 2, 3, 1)).astype(jnp.float32)
    if expansion != 1:
        x = jnp.tanh(jnp.einsum("nhwc,cd->nhwd", x, params["w1"]))
    N, H, W, C = x.shape
    Hout = (H - 3) // 2 + 1
    Wout = (W - 3) // 2 + 1
    acc = jnp.zeros((N, Hout, Wout, C), jnp.float32)
    for kh in range(3):
        for kw in range(3):
            acc = acc + x[:, kh:kh + 2 * Hout:2, kw:kw + 2 * Wout:2, :] * params["wdw"][kh, kw]
    x = jnp.tanh(acc)
    y = jnp.einsum("nhwc,cd->nhwd", x, params["wpw"])
    return jnp.transpose(y, (0, 3, 1, 2))


if __name__ == "__main__":
    in_fts, out_fts, expansion = 4, 8, 6
    N, H, W = 2, 16, 16

    key = jax.random.PRNGKey(0)
    kx, kp = jax.random.split(key)
    x = jax.random.normal(kx, (N, in_fts, H, W), jnp.float32)  # NCHW, like torch
    params = init_params(kp, in_fts, out_fts, expansion)

    out = jax.block_until_ready(net_for_stride_two(x, params, expansion))
    ref = jax.block_until_ready(ref_forward(x, params, expansion))

    assert out.shape == (N, out_fts, (H - 3) // 2 + 1, (W - 3) // 2 + 1), out.shape
    # Tolerance sized deliberately for bf16 MXU inputs with f32 accumulation
    # (an all-f32 path would match to ~1e-5).
    err = float(jnp.max(jnp.abs(out - ref)))
    assert jnp.allclose(out, ref, atol=3e-2, rtol=3e-2), err

    print("KERNEL_OK")
</pallas_src>

<mosaic_0001>
module attributes {stable_mosaic.version = 11 : i64} {
  func.func @_fused_kernel(%arg0: i32, %arg1: i32, %arg2: memref<1x4x8x8x4xf32, #tpu.memory_space<vmem>>, %arg3: memref<4x24xbf16, #tpu.memory_space<vmem>>, %arg4: memref<3x3x24xf32, #tpu.memory_space<vmem>>, %arg5: memref<24x8xbf16, #tpu.memory_space<vmem>>, %arg6: memref<1x56x8xf32, #tpu.memory_space<vmem>>, %arg7: memref<4x8x9x24xf32, #tpu.memory_space<vmem>>) attributes {dimension_semantics = [#tpu.dimension_semantics<parallel>, #tpu.dimension_semantics<parallel>], iteration_bounds = array<i64: 2, 1>, scalar_prefetch = 0 : i64, scratch_operands = 1 : i64, tpu.core_type = #tpu.core_type<tc>, window_params = [{transform_indices = @transform_0, window_bounds = array<i64: 1, 4, 8, 8, 4>}, {pipeline_mode = #tpu.pipeline_mode<synchronous>, transform_indices = @transform_1, window_bounds = array<i64: 4, 24>}, {pipeline_mode = #tpu.pipeline_mode<synchronous>, transform_indices = @transform_2, window_bounds = array<i64: 3, 3, 24>}, {pipeline_mode = #tpu.pipeline_mode<synchronous>, transform_indices = @transform_3, window_bounds = array<i64: 24, 8>}, {transform_indices = @transform_4, window_bounds = array<i64: 1, 56, 8>}]} {
    %c7_i32 = arith.constant 7 : i32
    %0 = arith.muli %arg1, %c7_i32 : i32
    %c0 = arith.constant 0 : index
    %c0_0 = arith.constant 0 : index
    %1 = arith.index_cast %0 : i32 to index
    %c0_1 = arith.constant 0 : index
    %c0_2 = arith.constant 0 : index
    %2 = vector.load %arg2[%c0, %c0_0, %1, %c0_1, %c0_2] : memref<1x4x8x8x4xf32, #tpu.memory_space<vmem>>, vector<1x4x8x8x4xf32>
    %3 = vector.shape_cast %2 : vector<1x4x8x8x4xf32> to vector<4x8x8x4xf32>
    %4 = vector.shape_cast %3 : vector<4x8x8x4xf32> to vector<256x4xf32>
    %5 = arith.truncf %4 : vector<256x4xf32> to vector<256x4xbf16>
    %c0_3 = arith.constant 0 : index
    %c0_4 = arith.constant 0 : index
    %6 = vector.load %arg3[%c0_3, %c0_4] : memref<4x24xbf16, #tpu.memory_space<vmem>>, vector<4x24xbf16>
    %cst = arith.constant dense<0.000000e+00> : vector<256x24xf32>
    %7 = tpu.matmul %5, %6, %cst {dimension_numbers = #tpu.dot_dimension_numbers<[1], [0], [0], [1], [0, 0, 1, 1], [], []>} : vector<256x4xbf16>, vector<4x24xbf16>, vector<256x24xf32> -> vector<256x24xf32>
    %8 = math.tanh %7 : vector<256x24xf32>
    %9 = vector.shape_cast %8 : vector<256x24xf32> to vector<4x8x8x24xf32>
    %cst_5 = arith.constant 0.000000e+00 : f32
    %10 = vector.broadcast %cst_5 : f32 to vector<4x8x1x24xf32>
    %c0_6 = arith.constant 0 : index
    %c0_7 = arith.constant 0 : index
    %c8 = arith.constant 8 : index
    %c0_8 = arith.constant 0 : index
    %11 = vector.load %arg7[%c0_6, %c0_7, %c8, %c0_8] : memref<4x8x9x24xf32, #tpu.memory_space<vmem>>, vector<4x8x1x24xf32>
    tpu.vector_store %arg7[%c0_6, %c0_7, %c8, %c0_8], %10 {strides = array<i32>} : memref<4x8x9x24xf32, #tpu.memory_space<vmem>>, vector<4x8x1x24xf32>,
    %c0_9 = arith.constant 0 : index
    %c0_10 = arith.constant 0 : index
    %c0_11 = arith.constant 0 : index
    %c0_12 = arith.constant 0 : index
    %12 = vector.load %arg7[%c0_9, %c0_10, %c0_11, %c0_12] : memref<4x8x9x24xf32, #tpu.memory_space<vmem>>, vector<4x8x8x24xf32>
    tpu.vector_store %arg7[%c0_9, %c0_10, %c0_11, %c0_12], %9 {strides = array<i32>} : memref<4x8x9x24xf32, #tpu.memory_space<vmem>>, vector<4x8x8x24xf32>,
    %c0_13 = arith.constant 0 : index
    %c0_14 = arith.constant 0 : index
    %c0_15 = arith.constant 0 : index
    %13 = vector.load %arg4[%c0_13, %c0_14, %c0_15] : memref<3x3x24xf32, #tpu.memory_space<vmem>>, vector<3x3x24xf32>
    %cst_16 = arith.constant 0.000000e+00 : f32
    %14 = vector.broadcast %cst_16 : f32 to vector<7x8x24xf32>
    %c0_17 = arith.constant 0 : index
    %c0_18 = arith.constant 0 : index
    %c0_19 = arith.constant 0 : index
    %c0_20 = arith.constant 0 : index
    %15 = vector.load %arg7[%c0_17, %c0_18, %c0_19, %c0_20] : memref<4x8x9x24xf32, #tpu.memory_space<vmem>>, vector<1x7x8x24xf32>
    %16 = vector.shape_cast %15 : vector<1x7x8x24xf32> to vector<7x8x24xf32>
    %17 = vector.extract_strided_slice %13 {offsets = [0, 0, 0], sizes = [1, 1, 24], strides = [1, 1, 1]} : vector<3x3x24xf32> to vector<1x1x24xf32>
    %18 = vector.broadcast %17 : vector<1x1x24xf32> to vector<7x8x24xf32>
    %19 = arith.mulf %16, %18 : vector<7x8x24xf32>
    %20 = arith.addf %14, %19 : vector<7x8x24xf32>
    %c1 = arith.constant 1 : index
    %c0_21 = arith.constant 0 : index
    %c0_22 = arith.constant 0 : index
    %c0_23 = arith.constant 0 : index
    %21 = vector.load %arg7[%c1, %c0_21, %c0_22, %c0_23] : memref<4x8x9x24xf32, #tpu.memory_space<vmem>>, vector<1x7x8x24xf32>
    %22 = vector.shape_cast %21 : vector<1x7x8x24xf32> to vector<7x8x24xf32>
    %23 = vector.extract_strided_slice %13 {offsets = [0, 1, 0], sizes = [1, 1, 24], strides = [1, 1, 1]} : vector<3x3x24xf32> to vector<1x1x24xf32>
    %24 = vector.broadcast %23 : vector<1x1x24xf32> to vector<7x8x24xf32>
    %25 = arith.mulf %22, %24 : vector<7x8x24xf32>
    %26 = arith.addf %20, %25 : vector<7x8x24xf32>
    %c0_24 = arith.constant 0 : index
    %c0_25 = arith.constant 0 : index
    %c1_26 = arith.constant 1 : index
    %c0_27 = arith.constant 0 : index
    %27 = vector.load %arg7[%c0_24, %c0_25, %c1_26, %c0_27] : memref<4x8x9x24xf32, #tpu.memory_space<vmem>>, vector<1x7x8x24xf32>
    %28 = vector.shape_cast %27 : vector<1x7x8x24xf32> to vector<7x8x24xf32>
    %29 = vector.extract_strided_slice %13 {offsets = [0, 2, 0], sizes = [1, 1, 24], strides = [1, 1, 1]} : vector<3x3x24xf32> to vector<1x1x24xf32>
    %30 = vector.broadcast %29 : vector<1x1x24xf32> to vector<7x8x24xf32>
    %31 = arith.mulf %28, %30 : vector<7x8x24xf32>
    %32 = arith.addf %26, %31 : vector<7x8x24xf32>
    %c2 = arith.constant 2 : index
    %c0_28 = arith.constant 0 : index
    %c0_29 = arith.constant 0 : index
    %c0_30 = arith.constant 0 : index
    %33 = vector.load %arg7[%c2, %c0_28, %c0_29, %c0_30] : memref<4x8x9x24xf32, #tpu.memory_space<vmem>>, vector<1x7x8x24xf32>
    %34 = vector.shape_cast %33 : vector<1x7x8x24xf32> to vector<7x8x24xf32>
    %35 = vector.extract_strided_slice %13 {offsets = [1, 0, 0], sizes = [1, 1, 24], strides = [1, 1, 1]} : vector<3x3x24xf32> to vector<1x1x24xf32>
    %36 = vector.broadcast %35 : vector<1x1x24xf32> to vector<7x8x24xf32>
    %37 = arith.mulf %34, %36 : vector<7x8x24xf32>
    %38 = arith.addf %32, %37 : vector<7x8x24xf32>
    %c3 = arith.constant 3 : index
    %c0_31 = arith.constant 0 : index
    %c0_32 = arith.constant 0 : index
    %c0_33 = arith.constant 0 : index
    %39 = vector.load %arg7[%c3, %c0_31, %c0_32, %c0_33] : memref<4x8x9x24xf32, #tpu.memory_space<vmem>>, vector<1x7x8x24xf32>
    %40 = vector.shape_cast %39 : vector<1x7x8x24xf32> to vector<7x8x24xf32>
    %41 = vector.extract_strided_slice %13 {offsets = [1, 1, 0], sizes = [1, 1, 24], strides = [1, 1, 1]} : vector<3x3x24xf32> to vector<1x1x24xf32>
    %42 = vector.broadcast %41 : vector<1x1x24xf32> to vector<7x8x24xf32>
    %43 = arith.mulf %40, %42 : vector<7x8x24xf32>
    %44 = arith.addf %38, %43 : vector<7x8x24xf32>
    %c2_34 = arith.constant 2 : index
    %c0_35 = arith.constant 0 : index
    %c1_36 = arith.constant 1 : index
    %c0_37 = arith.constant 0 : index
    %45 = vector.load %arg7[%c2_34, %c0_35, %c1_36, %c0_37] : memref<4x8x9x24xf32, #tpu.memory_space<vmem>>, vector<1x7x8x24xf32>
    %46 = vector.shape_cast %45 : vector<1x7x8x24xf32> to vector<7x8x24xf32>
    %47 = vector.extract_strided_slice %13 {offsets = [1, 2, 0], sizes = [1, 1, 24], strides = [1, 1, 1]} : vector<3x3x24xf32> to vector<1x1x24xf32>
    %48 = vector.broadcast %47 : vector<1x1x24xf32> to vector<7x8x24xf32>
    %49 = arith.mulf %46, %48 : vector<7x8x24xf32>
    %50 = arith.addf %44, %49 : vector<7x8x24xf32>
    %c0_38 = arith.constant 0 : index
    %c1_39 = arith.constant 1 : index
    %c0_40 = arith.constant 0 : index
    %c0_41 = arith.constant 0 : index
    %51 = vector.load %arg7[%c0_38, %c1_39, %c0_40, %c0_41] : memref<4x8x9x24xf32, #tpu.memory_space<vmem>>, vector<1x7x8x24xf32>
    %52 = vector.shape_cast %51 : vector<1x7x8x24xf32> to vector<7x8x24xf32>
    %53 = vector.extract_strided_slice %13 {offsets = [2, 0, 0], sizes = [1, 1, 24], strides = [1, 1, 1]} : vector<3x3x24xf32> to vector<1x1x24xf32>
    %54 = vector.broadcast %53 : vector<1x1x24xf32> to vector<7x8x24xf32>
    %55 = arith.mulf %52, %54 : vector<7x8x24xf32>
    %56 = arith.addf %50, %55 : vector<7x8x24xf32>
    %c1_42 = arith.constant 1 : index
    %c1_43 = arith.constant 1 : index
    %c0_44 = arith.constant 0 : index
    %c0_45 = arith.constant 0 : index
    %57 = vector.load %arg7[%c1_42, %c1_43, %c0_44, %c0_45] : memref<4x8x9x24xf32, #tpu.memory_space<vmem>>, vector<1x7x8x24xf32>
    %58 = vector.shape_cast %57 : vector<1x7x8x24xf32> to vector<7x8x24xf32>
    %59 = vector.extract_strided_slice %13 {offsets = [2, 1, 0], sizes = [1, 1, 24], strides = [1, 1, 1]} : vector<3x3x24xf32> to vector<1x1x24xf32>
    %60 = vector.broadcast %59 : vector<1x1x24xf32> to vector<7x8x24xf32>
    %61 = arith.mulf %58, %60 : vector<7x8x24xf32>
    %62 = arith.addf %56, %61 : vector<7x8x24xf32>
    %c0_46 = arith.constant 0 : index
    %c1_47 = arith.constant 1 : index
    %c1_48 = arith.constant 1 : index
    %c0_49 = arith.constant 0 : index
    %63 = vector.load %arg7[%c0_46, %c1_47, %c1_48, %c0_49] : memref<4x8x9x24xf32, #tpu.memory_space<vmem>>, vector<1x7x8x24xf32>
    %64 = vector.shape_cast %63 : vector<1x7x8x24xf32> to vector<7x8x24xf32>
    %65 = vector.extract_strided_slice %13 {offsets = [2, 2, 0], sizes = [1, 1, 24], strides = [1, 1, 1]} : vector<3x3x24xf32> to vector<1x1x24xf32>
    %66 = vector.broadcast %65 : vector<1x1x24xf32> to vector<7x8x24xf32>
    %67 = arith.mulf %64, %66 : vector<7x8x24xf32>
    %68 = arith.addf %62, %67 : vector<7x8x24xf32>
    %69 = math.tanh %68 : vector<7x8x24xf32>
    %70 = vector.shape_cast %69 : vector<7x8x24xf32> to vector<56x24xf32>
    %71 = arith.truncf %70 : vector<56x24xf32> to vector<56x24xbf16>
    %c0_50 = arith.constant 0 : index
    %c0_51 = arith.constant 0 : index
    %72 = vector.load %arg5[%c0_50, %c0_51] : memref<24x8xbf16, #tpu.memory_space<vmem>>, vector<24x8xbf16>
    %cst_52 = arith.constant dense<0.000000e+00> : vector<56x8xf32>
    %73 = tpu.matmul %71, %72, %cst_52 {dimension_numbers = #tpu.dot_dimension_numbers<[1], [0], [0], [1], [0, 0, 1, 1], [], []>} : vector<56x24xbf16>, vector<24x8xbf16>, vector<56x8xf32> -> vector<56x8xf32>
    %c0_53 = arith.constant 0 : index
    %c0_54 = arith.constant 0 : index
    %c0_55 = arith.constant 0 : index
    %74 = vector.load %arg6[%c0_53, %c0_54, %c0_55] : memref<1x56x8xf32, #tpu.memory_space<vmem>>, vector<1x56x8xf32>
    %75 = vector.shape_cast %74 : vector<1x56x8xf32> to vector<56x8xf32>
    %76 = vector.shape_cast %73 : vector<56x8xf32> to vector<1x56x8xf32>
    tpu.vector_store %arg6[%c0_53, %c0_54, %c0_55], %76 {strides = array<i32>} : memref<1x56x8xf32, #tpu.memory_space<vmem>>, vector<1x56x8xf32>,
    return
  }
  func.func @transform_0(%arg0: i32, %arg1: i32) -> (i32, i32, i32, i32, i32) {
    %c0_i32 = arith.constant 0 : i32
    %c0_i32_0 = arith.constant 0 : i32
    %c0_i32_1 = arith.constant 0 : i32
    %c0_i32_2 = arith.constant 0 : i32
    %c0_i32_3 = arith.constant 0 : i32
    return %arg0, %c0_i32, %c0_i32_0, %c0_i32_1, %c0_i32_2 : i32, i32, i32, i32, i32
  }
  func.func @transform_1(%arg0: i32, %arg1: i32) -> (i32, i32) {
    %c0_i32 = arith.constant 0 : i32
    %c0_i32_0 = arith.constant 0 : i32
    %c0_i32_1 = arith.constant 0 : i32
    return %c0_i32, %c0_i32_0 : i32, i32
  }
  func.func @transform_2(%arg0: i32, %arg1: i32) -> (i32, i32, i32) {
    %c0_i32 = arith.constant 0 : i32
    %c0_i32_0 = arith.constant 0 : i32
    %c0_i32_1 = arith.constant 0 : i32
    %c0_i32_2 = arith.constant 0 : i32
    return %c0_i32, %c0_i32_0, %c0_i32_1 : i32, i32, i32
  }
  func.func @transform_3(%arg0: i32, %arg1: i32) -> (i32, i32) {
    %c0_i32 = arith.constant 0 : i32
    %c0_i32_0 = arith.constant 0 : i32
    %c0_i32_1 = arith.constant 0 : i32
    return %c0_i32, %c0_i32_0 : i32, i32
  }
  func.func @transform_4(%arg0: i32, %arg1: i32) -> (i32, i32, i32) {
    %c0_i32 = arith.constant 0 : i32
    %c0_i32_0 = arith.constant 0 : i32
    return %arg0, %arg1, %c0_i32 : i32, i32, i32
  }
}

</mosaic_0001>

<bundles_post_ra>
// kernel: tpu_custom_call.1
= control target key start
LH: loop header
LB: loop body
LE: loop exit
PB: predicated region body
PF: predicated region fallthrough
CT: control target
= control target key end

     0   :  { %s1071_s15 = smov 0   ;;  %s1073_s16 = smov 0   ;;  %s1334_s0 = inlined_call_operand.vmem [shape: f32[2,4,8,8,4], index: 0, kind: input, shape index: {}]   ;;  %s1335_s1 = inlined_call_operand.vmem [shape: bf16[4,24], index: 1, kind: input, shape index: {}]   ;;  %s1336_s2 = inlined_call_operand.vmem [shape: f32[3,3,24], index: 2, kind: input, shape index: {}]   ;;  %s1337_s3 = inlined_call_operand.vmem [shape: bf16[24,8], index: 3, kind: input, shape index: {}]   ;;  %s1338_s4 = inlined_call_operand.vmem [shape: f32[2,56,8], index: 4, kind: output, shape index: {}]  }
   0x1   :  { %s1075_s17 = smov 0  }
   0x2 LB: > { %s26_s18 = sadd.s32 1, %s1039_s16  ;;  %p882_p0 = scmp.ge.s32.totalorder %s1043_s17, 1  ;;  %s1043_s17 = sphi %s1075_s17, %s14_s17   ;;  %s1039_s16 = sphi %s1073_s16, %s1340_s16   ;;  %s1035_s15 = sphi %s1071_s15, %s1339_s15  }
   0x3   : > { %p28_p1 = scmp.ge.s32.totalorder %s26_s18, 2  ;;  %p176_p2 = scmp.lt.s32.totalorder %s1043_s17, 3 }
   0x5   : > { %s1342_s18 = smov (%p28_p1, %s26_s18), 0  ;;  %p177_p3 = pnand %p882_p0, %p176_p2 }
   0x6   : > { %p206_p4 = scmp.lt.s32.totalorder (!%p177_p3), %s1035_s15, 1 }
   0x7   : > { %180 = sbr.rel (%p177_p3) target bundleno = 441 (0x1b9), region = 36 }
   0xc   : > { %v273_v0 = vld [vmem:[%s1335_s1] sm:$0x3]  ;;  %vm323_vm0 = vcmask 1041408   ;;  %s1344_s15 = smov (!%p206_p4, %s1035_s15), 1  ;;  %vm274_vm1 = vcmask 31744   ;;  %vm448_vm2 = vcmask 188416  }
   0xd   : > { %v325_v1 = vsel %vm323_vm0, %v273_v0, 0  ;;  %s912_s21 = sshll.u32 %s1344_s15, 8  ;;  %v1045_v50 = vmov 0.0   ;;  %vm481_vm3 = vcmask 195584   ;;  %vm755_vm4 = vcmask 1043456   ;;  %s917_s9 = smul.u32 56, %s1344_s15 }
   0xe   : > { %334 = vmatpush.bf16.msra.mxu0 %v325_v1  ;;  %915 = vmatpush.bf16.msra.mxu2 %v325_v1  ;;  %s1098_s24 = scalar_lea.vmem %s1334_s0, %s912_s21  ;;  %449 = vst.msk [vmem:[#allocation2 + $0x8] sm:$0x1] %vm448_vm2, %v1045_v50  ;;  %vm787_vm5 = vcmask 64512  }
   0xf   : > { %916 = vmatpush.bf16.msra.mxu3 %v325_v1  ;;  %914 = vmatpush.bf16.msra.mxu1 %v325_v1  ;;  %v225_v2 = vld [vmem:[%s1098_s24] sm:$0xff]  ;;  %v226_v3 = vld [vmem:[%s1098_s24 + $0x8] sm:$0xff]  ;;  %v247_v7 = vld [vmem:[%s1098_s24 + $0xb0] sm:$0xff]  ;;  %450 = vst.msk [vmem:[#allocation2 + $0x18] sm:$0x1] %vm448_vm2, %v1045_v50  ;;  %s219_s12 = scalar_lea.vmem %s1338_s4, %s917_s9 }
  0x10   : > { %v237_v4 = vld [vmem:[%s1098_s24 + $0x60] sm:$0xff]  ;;  %v257_v5 = vpack.c.bf16 %v226_v3, %v225_v2  ;;  %v238_v6 = vld [vmem:[%s1098_s24 + $0x68] sm:$0xff]  ;;  %v248_v8 = vld [vmem:[%s1098_s24 + $0xb8] sm:$0xff]  ;;  %451 = vst.msk [vmem:[#allocation2 + $0x28] sm:$0x1] %vm448_vm2, %v1045_v50 }
  0x11   : > { %v263_v9 = vpack.c.bf16 %v238_v6, %v237_v4  ;;  %v268_v10 = vpack.c.bf16 %v248_v8, %v247_v7  ;;  %v235_v11 = vld [vmem:[%s1098_s24 + $0x50] sm:$0xff]  ;;  %v236_v12 = vld [vmem:[%s1098_s24 + $0x58] sm:$0xff]  ;;  %v249_v18 = vld [vmem:[%s1098_s24 + $0xc0] sm:$0xff]  ;;  %465 = vst.msk [vmem:[#allocation2 + $0x108] sm:$0x1] %vm448_vm2, %v1045_v50 }
  0x12   : > { %886 = vmatmul.msk.bf16.vlgmr.msra.gmra.mxu0 %vm274_vm1, %v257_v5  ;;  %v262_v13 = vpack.c.bf16 %v236_v12, %v235_v11  ;;  %v227_v14 = vld [vmem:[%s1098_s24 + $0x10] sm:$0xff]  ;;  %v228_v15 = vld [vmem:[%s1098_s24 + $0x18] sm:$0xff]  ;;  %v250_v19 = vld [vmem:[%s1098_s24 + $0xc8] sm:$0xff]  ;;  %466 = vst.msk [vmem:[#allocation2 + $0x118] sm:$0x1] %vm448_vm2, %v1045_v50 }
  0x13   : > { %892 = vmatmul.msk.bf16.vlgmr.msra.gmra.mxu2 %vm274_vm1, %v263_v9  ;;  %897 = vmatmul.msk.bf16.vlgmr.msra.gmra.mxu3 %vm274_vm1, %v268_v10  ;;  %v239_v16 = vld [vmem:[%s1098_s24 + $0x70] sm:$0xff]  ;;  %v240_v17 = vld [vmem:[%s1098_s24 + $0x78] sm:$0xff]  ;;  %v258_v20 = vpack.c.bf16 %v228_v15, %v227_v14  ;;  %v269_v22 = vpack.c.bf16 %v250_v19, %v249_v18  ;;  %v229_v23 = vld [vmem:[%s1098_s24 + $0x20] sm:$0xff]  ;;  %452 = vst.msk [vmem:[#allocation2 + $0x38] sm:$0x1] %vm448_vm2, %v1045_v50 }
  0x14   : > { %891 = vmatmul.msk.bf16.vlgmr.msra.gmra.mxu1 %vm274_vm1, %v262_v13  ;;  %v264_v21 = vpack.c.bf16 %v240_v17, %v239_v16  ;;  %v230_v24 = vld [vmem:[%s1098_s24 + $0x28] sm:$0xff]  ;;  %v241_v25 = vld [vmem:[%s1098_s24 + $0x80] sm:$0xff]  ;;  %v251_v27 = vld [vmem:[%s1098_s24 + $0xd0] sm:$0xff]  ;;  %453 = vst.msk [vmem:[#allocation2 + $0x48] sm:$0x1] %vm448_vm2, %v1045_v50 }
  0x15   : > { %v242_v26 = vld [vmem:[%s1098_s24 + $0x88] sm:$0xff]  ;;  %v252_v28 = vld [vmem:[%s1098_s24 + $0xd8] sm:$0xff]  ;;  %v259_v29 = vpack.c.bf16 %v230_v24, %v229_v23  ;;  %v231_v32 = vld [vmem:[%s1098_s24 + $0x30] sm:$0xff]  ;;  %454 = vst.msk [vmem:[#allocation2 + $0x58] sm:$0x1] %vm448_vm2, %v1045_v50 }
  0x16   : > { %v265_v30 = vpack.c.bf16 %v242_v26, %v241_v25  ;;  %v270_v31 = vpack.c.bf16 %v252_v28, %v251_v27  ;;  %v232_v33 = vld [vmem:[%s1098_s24 + $0x38] sm:$0xff]  ;;  %v243_v34 = vld [vmem:[%s1098_s24 + $0x90] sm:$0xff]  ;;  %v253_v36 = vld [vmem:[%s1098_s24 + $0xe0] sm:$0xff]  ;;  %455 = vst.msk [vmem:[#allocation2 + $0x68] sm:$0x1] %vm448_vm2, %v1045_v50 }
  0x17   : > { %v244_v35 = vld [vmem:[%s1098_s24 + $0x98] sm:$0xff]  ;;  %v254_v37 = vld [vmem:[%s1098_s24 + $0xe8] sm:$0xff]  ;;  %v260_v38 = vpack.c.bf16 %v232_v33, %v231_v32  ;;  %v233_v41 = vld [vmem:[%s1098_s24 + $0x40] sm:$0xff]  ;;  %456 = vst.msk [vmem:[#allocation2 + $0x78] sm:$0x1] %vm448_vm2, %v1045_v50 }
  0x18   : > { %v266_v39 = vpack.c.bf16 %v244_v35, %v243_v34  ;;  %v271_v40 = vpack.c.bf16 %v254_v37, %v253_v36  ;;  %v234_v42 = vld [vmem:[%s1098_s24 + $0x48] sm:$0xff]  ;;  %v245_v43 = vld [vmem:[%s1098_s24 + $0xa0] sm:$0xff]  ;;  %v255_v45 = vld [vmem:[%s1098_s24 + $0xf0] sm:$0xff]  ;;  %467 = vst.msk [vmem:[#allocation2 + $0x128] sm:$0x1] %vm448_vm2, %v1045_v50 }
  0x19   : > { %v246_v44 = vld [vmem:[%s1098_s24 + $0xa8] sm:$0xff]  ;;  %v256_v46 = vld [vmem:[%s1098_s24 + $0xf8] sm:$0xff]  ;;  %v261_v47 = vpack.c.bf16 %v234_v42, %v233_v41  ;;  %468 = vst.msk [vmem:[#allocation2 + $0x138] sm:$0x1] %vm448_vm2, %v1045_v50  ;;  %v913_v36 = vld [vmem:[%s1337_s3] sm:$0xff] }
  0x1a   : > { %v267_v48 = vpack.c.bf16 %v246_v44, %v245_v43  ;;  %v272_v49 = vpack.c.bf16 %v256_v46, %v255_v45  ;;  %469 = vst.msk [vmem:[#allocation2 + $0x148] sm:$0x1] %vm448_vm2, %v1045_v50 }
  0x1b   : > { %470 = vst.msk [vmem:[#allocation2 + $0x158] sm:$0x1] %vm448_vm2, %v1045_v50 }
  0x1c   : > { %471 = vst.msk [vmem:[#allocation2 + $0x168] sm:$0x1] %vm448_vm2, %v1045_v50 }
  0x22   : > { %887 = vmatmul.msk.bf16.gmra.mxu0 %vm274_vm1, %v258_v20 }
  0x23   : > { %893 = vmatmul.msk.bf16.gmra.mxu2 %vm274_vm1, %v264_v21  ;;  %898 = vmatmul.msk.bf16.gmra.mxu3 %vm274_vm1, %v269_v22 }
  0x32   : > { %888 = vmatmul.msk.bf16.gmra.mxu0 %vm274_vm1, %v259_v29 }
  0x33   : > { %894 = vmatmul.msk.bf16.gmra.mxu2 %vm274_vm1, %v265_v30  ;;  %899 = vmatmul.msk.bf16.gmra.mxu3 %vm274_vm1, %v270_v31  ;;  %v733_v30 = vld [vmem:[%s1337_s3 + $0x8] sm:$0xf] }
  0x34   : > { %v739_v33 = vunpack.c.l.b16 %v733_v30 }
  0x36   : > { %v741_v34 = vpack.c.b16 %v739_v33, %v739_v33 }
  0x38   : > { %v757_v35 = vsel %vm755_vm4, %v741_v34, 0 }
  0x39   : > { %765 = vmatpush.bf16.msrb.mxu1 %v757_v35 }
  0x3d   : > { %766 = vmatpush.bf16.msrb.mxu1 %v913_v36 }
  0x42   : > { %889 = vmatmul.msk.bf16.gmra.mxu0 %vm274_vm1, %v260_v38 }
  0x43   : > { %895 = vmatmul.msk.bf16.gmra.mxu2 %vm274_vm1, %v266_v39  ;;  %900 = vmatmul.msk.bf16.gmra.mxu3 %vm274_vm1, %v271_v40 }
  0x52   : > { %890 = vmatmul.msk.bf16.gmra.mxu0 %vm274_vm1, %v261_v47 }
  0x53   : > { %896 = vmatmul.msk.bf16.gmra.mxu2 %vm274_vm1, %v267_v48  ;;  %901 = vmatmul.msk.bf16.gmra.mxu3 %vm274_vm1, %v272_v49  ;;  %v514_v49 = vld [vmem:[%s1336_s2] sm:$0x7] }
  0x54   : > { %v1198_v50 = vperm.slane %v514_v49, 0 }
  0x8f   : > { %v336_v51 = vpop.f32.mrf.mxu0 }
  0x90   : > { %943 = vtanh.f32 %v336_v51 }
  0x91   : > { %v361_v52 = vpop.f32.mrf.mxu1 }
  0x92   : > { %945 = vtanh.f32 %v361_v52  ;;  %v515_v52 = vld [vmem:[%s1336_s2 + $0x4] sm:$0x7] }
  0x96   : > { %v944_v53 = vpop.eup %943  ;;  %v366_v54 = vpop.f32.mrf.mxu2 }
  0x97   : > { %v391_v55 = vpop.f32.mrf.mxu3  ;;  %482 = vst.msk [vmem:[#allocation2] sm:$0xff] %vm481_vm3, %v944_v53  ;;  %947 = vtanh.f32 %v366_v54  ;;  %v338_v56 = vpop.f32.mrf.mxu0 }
  0x98   : > { %949 = vtanh.f32 %v391_v55  ;;  %v946_v57 = vpop.eup %945 }
  0x99   : > { %951 = vtanh.f32 %v338_v56  ;;  %492 = vst.msk [vmem:[#allocation2 + $0xa0] sm:$0xff] %vm481_vm3, %v946_v57  ;;  %v363_v58 = vpop.f32.mrf.mxu1  ;;  %v1204_v56 = vperm.slane %v514_v49, 1  ;;  %v1206_v57 = vperm.slane %v514_v49, 2 }
  0x9a   : > { %953 = vtanh.f32 %v363_v58 }
  0x9d   : > { %v948_v59 = vpop.eup %947 }
  0x9e   : > { %v950_v60 = vpop.eup %949  ;;  %494 = vst.msk [vmem:[#allocation2 + $0xc0] sm:$0xff] %vm481_vm3, %v948_v59  ;;  %v368_v61 = vpop.f32.mrf.mxu2  ;;  %v517_v53 = vld [vmem:[#allocation2] sm:$0xff] }
  0x9f   : > { %v393_v62 = vpop.f32.mrf.mxu3  ;;  %v952_v63 = vpop.eup %951  ;;  %504 = vst.msk [vmem:[#allocation2 + $0x160] sm:$0xff] %vm481_vm3, %v950_v60  ;;  %955 = vtanh.f32 %v368_v61  ;;  %v562_v60 = vld [vmem:[#allocation2 + $0x1] sm:$0xff] }
  0xa0   : > { %v341_v0 = vpop.f32.mrf.mxu0  ;;  %483 = vst.msk [vmem:[#allocation2 + $0x10] sm:$0xff] %vm481_vm3, %v952_v63  ;;  %957 = vtanh.f32 %v393_v62  ;;  %v954_v1 = vpop.eup %953  ;;  %v525_v62 = vmul.f32 %v1198_v50, %v517_v53 }
  0xa1   : > { %959 = vtanh.f32 %v341_v0  ;;  %493 = vst.msk [vmem:[#allocation2 + $0xb0] sm:$0xff] %vm481_vm3, %v954_v1  ;;  %v1212_v0 = vperm.slane %v515_v52, 0 }
  0xa5   : > { %v956_v2 = vpop.eup %955 }
  0xa6   : > { %v958_v3 = vpop.eup %957  ;;  %495 = vst.msk [vmem:[#allocation2 + $0xd0] sm:$0xff] %vm481_vm3, %v956_v2  ;;  %v371_v4 = vpop.f32.mrf.mxu2 }
  0xa7   : > { %v396_v5 = vpop.f32.mrf.mxu3  ;;  %v960_v6 = vpop.eup %959  ;;  %961 = vtanh.f32 %v371_v4  ;;  %v570_v3 = vmul.f32 %v1206_v57, %v562_v60 }
  0xa8   : > { %v343_v7 = vpop.f32.mrf.mxu0  ;;  %484 = vst.msk [vmem:[#allocation2 + $0x20] sm:$0xff] %vm481_vm3, %v960_v6  ;;  %963 = vtanh.f32 %v396_v5  ;;  %v1216_v5 = vperm.slane %v515_v52, 1 }
  0xa9   : > { %965 = vtanh.f32 %v343_v7 }
  0xad   : > { %v962_v8 = vpop.eup %961 }
  0xae   : > { %v964_v9 = vpop.eup %963  ;;  %496 = vst.msk [vmem:[#allocation2 + $0xe0] sm:$0xff] %vm481_vm3, %v962_v8  ;;  %v373_v10 = vpop.f32.mrf.mxu2  ;;  %v1220_v8 = vld [vmem:[#allocation2 + $0xb0] sm:$0xff] }
  0xaf   : > { %v398_v11 = vpop.f32.mrf.mxu3  ;;  %v966_v12 = vpop.eup %965  ;;  %506 = vst.msk [vmem:[#allocation2 + $0x180] sm:$0xff] %vm481_vm3, %v964_v9  ;;  %967 = vtanh.f32 %v373_v10  ;;  %v516_v9 = vld [vmem:[%s1336_s2 + $0x8] sm:$0x7] }
  0xb0   : > { %v346_v13 = vpop.f32.mrf.mxu0  ;;  %485 = vst.msk [vmem:[#allocation2 + $0x30] sm:$0xff] %vm481_vm3, %v966_v12  ;;  %969 = vtanh.f32 %v398_v11  ;;  %v654_v12 = vld [vmem:[#allocation2 + $0x20] sm:$0xff]  ;;  %v1251_v49 = vperm.slane %v516_v9, 1  ;;  %v1257_v60 = vperm.slane %v516_v9, 2 }
  0xb1   : > { %971 = vtanh.f32 %v346_v13  ;;  %v1226_v13 = vld [vmem:[#allocation2 + $0xa0] sm:$0xff] }
  0xb5   : > { %v968_v14 = vpop.eup %967 }
  0xb6   : > { %v970_v15 = vpop.eup %969  ;;  %497 = vst.msk [vmem:[#allocation2 + $0xf0] sm:$0xff] %vm481_vm3, %v968_v14  ;;  %v376_v16 = vpop.f32.mrf.mxu2  ;;  %v608_v1 = vld [vmem:[#allocation2 + $0x180] sm:$0xff] }
  0xb7   : > { %v401_v17 = vpop.f32.mrf.mxu3  ;;  %v972_v18 = vpop.eup %971  ;;  %507 = vst.msk [vmem:[#allocation2 + $0x190] sm:$0xff] %vm481_vm3, %v970_v15  ;;  %973 = vtanh.f32 %v376_v16  ;;  %v1218_v7 = vld [vmem:[#allocation2 + $0x30] sm:$0xff]  ;;  %v616_v11 = vmul.f32 %v1216_v5, %v608_v1 }
  0xb8   : > { %v348_v19 = vpop.f32.mrf.mxu0  ;;  %486 = vst.msk [vmem:[#allocation2 + $0x40] sm:$0xff] %vm481_vm3, %v972_v18  ;;  %975 = vtanh.f32 %v401_v17  ;;  %v518_v15 = vld [vmem:[#allocation2 + $0x10] sm:$0xff]  ;;  %v1229_v18 = vperm.slane %v515_v52, 2 }
  0xb9   : > { %977 = vtanh.f32 %v348_v19  ;;  %v528_v19 = vmul.f32 %v1198_v50, %v1218_v7 }
  0xbd   : > { %v974_v20 = vpop.eup %973 }
  0xbe   : > { %v976_v21 = vpop.eup %975  ;;  %498 = vst.msk [vmem:[#allocation2 + $0x100] sm:$0xff] %vm481_vm3, %v974_v20  ;;  %v378_v22 = vpop.f32.mrf.mxu2  ;;  %v551_v20 = vmul.f32 %v1204_v56, %v1220_v8 }
  0xbf   : > { %v403_v23 = vpop.f32.mrf.mxu3  ;;  %v978_v24 = vpop.eup %977  ;;  %508 = vst.msk [vmem:[#allocation2 + $0x1a0] sm:$0xff] %vm481_vm3, %v976_v21  ;;  %979 = vtanh.f32 %v378_v22  ;;  %v563_v22 = vld [vmem:[#allocation2 + $0x11] sm:$0xff] }
  0xc0   : > { %v351_v25 = vpop.f32.mrf.mxu0  ;;  %487 = vst.msk [vmem:[#allocation2 + $0x50] sm:$0xff] %vm481_vm3, %v978_v24  ;;  %981 = vtanh.f32 %v403_v23  ;;  %v1235_v23 = vperm.slane %v516_v9, 0  ;;  %v527_v24 = vmul.f32 %v654_v12, %v1198_v50  ;;  %v571_v35 = vmul.f32 %v1206_v57, %v563_v22 }
  0xc1   : > { %983 = vtanh.f32 %v351_v25  ;;  %v550_v25 = vmul.f32 %v1226_v13, %v1204_v56 }
  0xc5   : > { %v980_v26 = vpop.eup %979  ;;  %v585_v61 = vld [vmem:[#allocation2 + $0x100] sm:$0xff] }
  0xc6   : > { %v982_v27 = vpop.eup %981  ;;  %499 = vst.msk [vmem:[#allocation2 + $0x110] sm:$0xff] %vm481_vm3, %v980_v26  ;;  %v381_v28 = vpop.f32.mrf.mxu2  ;;  %v593_v4 = vmul.f32 %v1212_v0, %v585_v61  ;;  %v630_v16 = vld [vmem:[#allocation2 + $0x101] sm:$0xff]  ;;  %v526_v26 = vmul.f32 %v1198_v50, %v518_v15 }
  0xc7   : > { %v406_v29 = vpop.f32.mrf.mxu3  ;;  %v984_v31 = vpop.eup %983  ;;  %509 = vst.msk [vmem:[#allocation2 + $0x1b0] sm:$0xff] %vm481_vm3, %v982_v27  ;;  %985 = vtanh.f32 %v381_v28 }
  0xc8   : > { %v353_v32 = vpop.f32.mrf.mxu0  ;;  %488 = vst.msk [vmem:[#allocation2 + $0x60] sm:$0xff] %vm481_vm3, %v984_v31  ;;  %987 = vtanh.f32 %v406_v29  ;;  %v638_v29 = vmul.f32 %v1229_v18, %v630_v16  ;;  %v1243_v31 = vld [vmem:[#allocation2 + $0x31] sm:$0xff]  ;;  %v706_v16 = vmul.f32 %v1257_v60, %v563_v22 }
  0xc9   : > { %989 = vtanh.f32 %v353_v32 }
  0xcd   : > { %v986_v37 = vpop.eup %985  ;;  %v586_v30 = vld [vmem:[#allocation2 + $0x110] sm:$0xff] }
  0xce   : > { %v988_v38 = vpop.eup %987  ;;  %500 = vst.msk [vmem:[#allocation2 + $0x120] sm:$0xff] %vm481_vm3, %v986_v37  ;;  %v383_v39 = vpop.f32.mrf.mxu2  ;;  %v699_v37 = vld [vmem:[#allocation2 + $0x21] sm:$0xff]  ;;  %v611_v52 = vld [vmem:[#allocation2 + $0x1b0] sm:$0xff] }
  0xcf   : > { %v408_v40 = vpop.f32.mrf.mxu3  ;;  %v990_v41 = vpop.eup %989  ;;  %510 = vst.msk [vmem:[#allocation2 + $0x1c0] sm:$0xff] %vm481_vm3, %v988_v38  ;;  %991 = vtanh.f32 %v383_v39  ;;  %v558_v38 = vadd.f32 %v551_v20, %v528_v19  ;;  %v609_v39 = vld [vmem:[#allocation2 + $0x190] sm:$0xff]  ;;  %v685_v20 = vmul.f32 %v1251_v49, %v1226_v13 }
  0xd0   : > { %v356_v42 = vpop.f32.mrf.mxu0  ;;  %489 = vst.msk [vmem:[#allocation2 + $0x70] sm:$0xff] %vm481_vm3, %v990_v41  ;;  %993 = vtanh.f32 %v408_v40  ;;  %v661_v40 = vmul.f32 %v1235_v23, %v518_v15  ;;  %v557_v41 = vadd.f32 %v550_v25, %v527_v24  ;;  %v679_v25 = vld [vmem:[#allocation2 + $0xc0] sm:$0xff] }
  0xd1   : > { %995 = vtanh.f32 %v356_v42 }
  0xd5   : > { %v992_v43 = vpop.eup %991  ;;  %v587_v42 = vld [vmem:[#allocation2 + $0x120] sm:$0xff] }
  0xd6   : > { %v994_v44 = vpop.eup %993  ;;  %501 = vst.msk [vmem:[#allocation2 + $0x130] sm:$0xff] %vm481_vm3, %v992_v43  ;;  %v386_v45 = vpop.f32.mrf.mxu2  ;;  %v632_v9 = vld [vmem:[#allocation2 + $0x121] sm:$0xff] }
  0xd7   : > { %v411_v46 = vpop.f32.mrf.mxu3  ;;  %v996_v47 = vpop.eup %995  ;;  %511 = vst.msk [vmem:[#allocation2 + $0x1d0] sm:$0xff] %vm481_vm3, %v994_v44  ;;  %997 = vtanh.f32 %v386_v45  ;;  %v594_v44 = vmul.f32 %v1212_v0, %v586_v30  ;;  %v573_v45 = vmul.f32 %v1206_v57, %v1243_v31  ;;  %v640_v22 = vmul.f32 %v1229_v18, %v632_v9  ;;  %v658_v9 = vld [vmem:[#allocation2 + $0x60] sm:$0xff] }
  0xd8   : > { %v358_v48 = vpop.f32.mrf.mxu0  ;;  %490 = vst.msk [vmem:[#allocation2 + $0x80] sm:$0xff] %vm481_vm3, %v996_v47  ;;  %999 = vtanh.f32 %v411_v46  ;;  %v631_v47 = vld [vmem:[#allocation2 + $0x111] sm:$0xff] }
  0xd9   : > { %1001 = vtanh.f32 %v358_v48  ;;  %v639_v1 = vmul.f32 %v1229_v18, %v631_v47 }
  0xdd   : > { %v998_v51 = vpop.eup %997  ;;  %v588_v32 = vld [vmem:[#allocation2 + $0x130] sm:$0xff] }
  0xde   : > { %v1000_v54 = vpop.eup %999  ;;  %502 = vst.msk [vmem:[#allocation2 + $0x140] sm:$0xff] %vm481_vm3, %v998_v51  ;;  %v388_v55 = vpop.f32.mrf.mxu2  ;;  %v596_v46 = vmul.f32 %v1212_v0, %v588_v32  ;;  %v572_v51 = vmul.f32 %v699_v37, %v1206_v57 }
  0xdf   : > { %v1002_v58 = vpop.eup %1001  ;;  %512 = vst.msk [vmem:[#allocation2 + $0x1e0] sm:$0xff] %vm481_vm3, %v1000_v54  ;;  %1003 = vtanh.f32 %v388_v55  ;;  %v540_v59 = vld [vmem:[#allocation2 + $0x80] sm:$0xff]  ;;  %v413_v6 = vpop.f32.mrf.mxu3  ;;  %v617_v54 = vmul.f32 %v1216_v5, %v609_v39  ;;  %v580_v55 = vadd.f32 %v573_v45, %v558_v38 }
  0xe0   : > { %491 = vst.msk [vmem:[#allocation2 + $0x90] sm:$0xff] %vm481_vm3, %v1002_v58  ;;  %v548_v63 = vmul.f32 %v1204_v56, %v540_v59  ;;  %1005 = vtanh.f32 %v413_v6  ;;  %v595_v58 = vmul.f32 %v1212_v0, %v587_v42  ;;  %v579_v61 = vadd.f32 %v572_v51, %v557_v41  ;;  %v633_v6 = vld [vmem:[#allocation2 + $0x131] sm:$0xff] }
  0xe1   : > { %v641_v24 = vmul.f32 %v1229_v18, %v633_v6  ;;  %v663_v42 = vmul.f32 %v1235_v23, %v1218_v7  ;;  %v686_v51 = vmul.f32 %v1251_v49, %v1220_v8 }
  0xe2   : > { %v555_v2 = vadd.f32 %v548_v63, %v525_v62  ;;  %v610_v62 = vld [vmem:[#allocation2 + $0x1a0] sm:$0xff] }
  0xe3   : > { %v618_v15 = vmul.f32 %v1216_v5, %v610_v62 }
  0xe4   : > { %v577_v10 = vadd.f32 %v570_v3, %v555_v2  ;;  %v603_v2 = vadd.f32 %v596_v46, %v580_v55  ;;  %v619_v3 = vmul.f32 %v1216_v5, %v611_v52  ;;  %v687_v52 = vmul.f32 %v1251_v49, %v679_v25 }
  0xe5   : > { %v1004_v14 = vpop.eup %1003 }
  0xe6   : > { %503 = vst.msk [vmem:[#allocation2 + $0x150] sm:$0xff] %vm481_vm3, %v1004_v14  ;;  %v600_v17 = vadd.f32 %v593_v4, %v577_v10  ;;  %v1006_v33 = vpop.eup %1005  ;;  %v602_v14 = vadd.f32 %v595_v58, %v579_v61  ;;  %v612_v61 = vld [vmem:[#allocation2 + $0x1c0] sm:$0xff] }
  0xe7   : > { %v541_v21 = vld [vmem:[#allocation2 + $0x90] sm:$0xff]  ;;  %v552_v33 = vmul.f32 %v679_v25, %v1204_v56 }
  0xe8   : > { %v549_v27 = vmul.f32 %v1204_v56, %v541_v21  ;;  %v623_v28 = vadd.f32 %v616_v11, %v600_v17  ;;  %v684_v59 = vmul.f32 %v1251_v49, %v541_v21  ;;  %v662_v11 = vmul.f32 %v1235_v23, %v654_v12  ;;  %v1264_v17 = vld [vmem:[#allocation2 + $0x50] sm:$0xff]  ;;  %v656_v12 = vld [vmem:[#allocation2 + $0x40] sm:$0xff] }
  0xe9   : > { %v626_v21 = vadd.f32 %v619_v3, %v603_v2  ;;  %v625_v30 = vadd.f32 %v618_v15, %v602_v14  ;;  %v530_v32 = vmul.f32 %v1198_v50, %v1264_v17  ;;  %v620_v14 = vmul.f32 %v1216_v5, %v612_v61  ;;  %v681_v15 = vld [vmem:[#allocation2 + $0xe0] sm:$0xff] }
  0xea   : > { %v556_v34 = vadd.f32 %v549_v27, %v526_v26  ;;  %v645_v36 = vadd.f32 %v638_v29, %v623_v28  ;;  %v707_v26 = vmul.f32 %v1257_v60, %v699_v37  ;;  %v1270_v28 = vld [vmem:[#allocation2 + $0xd0] sm:$0xff]  ;;  %v554_v25 = vmul.f32 %v681_v15, %v1204_v56 }
  0xeb   : > { %v1279_v37 = vld [vmem:[#allocation2 + $0x51] sm:$0xff]  ;;  %v647_v39 = vadd.f32 %v640_v22, %v625_v30  ;;  %v703_v22 = vld [vmem:[#allocation2 + $0x61] sm:$0xff] }
  0xec   : > { %v578_v43 = vadd.f32 %v571_v35, %v556_v34  ;;  %v668_v48 = vadd.f32 %v661_v40, %v645_v36  ;;  %v648_v34 = vadd.f32 %v641_v24, %v626_v21  ;;  %v529_v35 = vmul.f32 %v656_v12, %v1198_v50 }
  0xed   : > { %v553_v36 = vmul.f32 %v1204_v56, %v1270_v28  ;;  %v590_v38 = vld [vmem:[#allocation2 + $0x150] sm:$0xff]  ;;  %v664_v40 = vmul.f32 %v1235_v23, %v656_v12  ;;  %v575_v47 = vmul.f32 %v1206_v57, %v1279_v37  ;;  %v576_v56 = vmul.f32 %v703_v22, %v1206_v57 }
  0xee   : > { %v601_v53 = vadd.f32 %v594_v44, %v578_v43  ;;  %v691_v4 = vadd.f32 %v684_v59, %v668_v48  ;;  %v701_v43 = vld [vmem:[#allocation2 + $0x41] sm:$0xff]  ;;  %v559_v46 = vadd.f32 %v552_v33, %v529_v35  ;;  %v598_v48 = vmul.f32 %v1212_v0, %v590_v38  ;;  %v635_v6 = vld [vmem:[#allocation2 + $0x151] sm:$0xff] }
  0xef   : > { %v560_v41 = vadd.f32 %v553_v36, %v530_v32  ;;  %v589_v44 = vld [vmem:[#allocation2 + $0x140] sm:$0xff]  ;;  %v671_v45 = vadd.f32 %v664_v40, %v648_v34  ;;  %v574_v55 = vmul.f32 %v701_v43, %v1206_v57  ;;  %v643_v24 = vmul.f32 %v1229_v18, %v635_v6 }
  0xf0   : > { %v624_v63 = vadd.f32 %v617_v54, %v601_v53  ;;  %v713_v27 = vadd.f32 %v706_v16, %v691_v4  ;;  %v613_v53 = vld [vmem:[#allocation2 + $0x1d0] sm:$0xff]  ;;  %v670_v54 = vadd.f32 %v663_v42, %v647_v39  ;;  %v597_v7 = vmul.f32 %v1212_v0, %v589_v44  ;;  %v634_v16 = vld [vmem:[#allocation2 + $0x141] sm:$0xff] }
  0xf1   : > { %v582_v58 = vadd.f32 %v575_v47, %v560_v41  ;;  %v621_v3 = vmul.f32 %v1216_v5, %v613_v53  ;;  %v642_v12 = vmul.f32 %v1229_v18, %v634_v16  ;;  %v666_v33 = vmul.f32 %v1235_v23, %v658_v9  ;;  %v614_v36 = vld [vmem:[#allocation2 + $0x1e0] sm:$0xff] }
  0xf2   : > { %v646_v10 = vadd.f32 %v639_v1, %v624_v63  ;;  %1007 = vtanh.f32 %v713_v27  ;;  %v694_v63 = vadd.f32 %v687_v52, %v671_v45  ;;  %v581_v1 = vadd.f32 %v574_v55, %v559_v46 }
  0xf3   : > { %v605_v2 = vadd.f32 %v598_v48, %v582_v58  ;;  %v693_v8 = vadd.f32 %v686_v51, %v670_v54  ;;  %v665_v34 = vmul.f32 %v1235_v23, %v1264_v17  ;;  %v622_v45 = vmul.f32 %v1216_v5, %v614_v36  ;;  %v636_v48 = vld [vmem:[#allocation2 + $0x161] sm:$0xff]  ;;  %v682_v58 = vld [vmem:[#allocation2 + $0xf0] sm:$0xff] }
  0xf4   : > { %v669_v19 = vadd.f32 %v662_v11, %v646_v10  ;;  %v709_v10 = vmul.f32 %v1257_v60, %v701_v43  ;;  %v604_v11 = vadd.f32 %v597_v7, %v581_v1  ;;  %v688_v43 = vmul.f32 %v1251_v49, %v1270_v28  ;;  %v659_v28 = vld [vmem:[#allocation2 + $0x70] sm:$0xff] }
  0xf5   : > { %v628_v21 = vadd.f32 %v621_v3, %v605_v2  ;;  %v711_v47 = vmul.f32 %v1257_v60, %v703_v22  ;;  %v710_v51 = vmul.f32 %v1257_v60, %v1279_v37  ;;  %v644_v54 = vmul.f32 %v1229_v18, %v636_v48 }
  0xf6   : > { %v692_v29 = vadd.f32 %v685_v20, %v669_v19  ;;  %v708_v19 = vmul.f32 %v1257_v60, %v1243_v31  ;;  %v716_v20 = vadd.f32 %v709_v10, %v694_v63  ;;  %v627_v27 = vadd.f32 %v620_v14, %v604_v11 }
  0xf7   : > { %v650_v30 = vadd.f32 %v643_v24, %v628_v21  ;;  %v667_v5 = vmul.f32 %v1235_v23, %v659_v28  ;;  %v690_v61 = vmul.f32 %v1251_v49, %v682_v58 }
  0xf8   : > { %v714_v13 = vadd.f32 %v707_v26, %v692_v29  ;;  %v1008_v59 = vpop.eup %1007  ;;  %v715_v26 = vadd.f32 %v708_v19, %v693_v8  ;;  %v531_v29 = vmul.f32 %v658_v9, %v1198_v50  ;;  %v649_v32 = vadd.f32 %v642_v12, %v627_v27 }
  0xf9   : > { %v673_v35 = vadd.f32 %v666_v33, %v650_v30  ;;  %v689_v50 = vmul.f32 %v1251_v49, %v681_v15 }
  0xfa   : > { %1009 = vtanh.f32 %v714_v13  ;;  %v561_v31 = vadd.f32 %v554_v25, %v531_v29  ;;  %v591_v13 = vld [vmem:[#allocation2 + $0x160] sm:$0xff]  ;;  %v672_v39 = vadd.f32 %v665_v34, %v649_v32 }
  0xfb   : > { %1011 = vtanh.f32 %v716_v20  ;;  %v599_v41 = vmul.f32 %v1212_v0, %v591_v13  ;;  %v696_v44 = vadd.f32 %v689_v50, %v673_v35 }
  0xfc   : > { %1013 = vtanh.f32 %v715_v26  ;;  %v583_v40 = vadd.f32 %v576_v56, %v561_v31  ;;  %v695_v17 = vadd.f32 %v688_v43, %v672_v39 }
  0xfd   : > { %v718_v52 = vadd.f32 %v711_v47, %v696_v44 }
  0xfe   : > { %v606_v57 = vadd.f32 %v599_v41, %v583_v40  ;;  %v717_v53 = vadd.f32 %v710_v51, %v695_v17 }
  0xff   : > { %1015 = vtanh.f32 %v718_v52 }
 0x100   : > { %v1010_v62 = vpop.eup %1009  ;;  %v629_v0 = vadd.f32 %v622_v45, %v606_v57  ;;  %1017 = vtanh.f32 %v717_v53 }
 0x101   : > { %v727_v4 = vpack.c.bf16 %v1010_v62, %v1008_v59  ;;  %v1012_v38 = vpop.eup %1011  ;;  %v704_v62 = vld [vmem:[#allocation2 + $0x71] sm:$0xff] }
 0x102   : > { %v1014_v42 = vpop.eup %1013  ;;  %v651_v55 = vadd.f32 %v644_v54, %v629_v0  ;;  %v712_v2 = vmul.f32 %v1257_v60, %v704_v62 }
 0x103   : > { %906 = vmatmul.msk.bf16.vlgmr.msrb.gmra.mxu1 %vm481_vm3, %v727_v4  ;;  %v728_v46 = vpack.c.bf16 %v1012_v38, %v1014_v42 }
 0x104   : > { %v674_v7 = vadd.f32 %v667_v5, %v651_v55 }
 0x105   : > { %v1016_v59 = vpop.eup %1015 }
 0x106   : > { %v1018_v63 = vpop.eup %1017  ;;  %v697_v37 = vadd.f32 %v690_v61, %v674_v7 }
 0x107   : > { %v729_v1 = vpack.c.bf16 %v1016_v59, %v1018_v63 }
 0x108   : > { %v719_v18 = vadd.f32 %v712_v2, %v697_v37 }
 0x10a   : > { %1019 = vtanh.f32 %v719_v18 }
 0x110   : > { %v1020_v3 = vpop.eup %1019 }
 0x111   : > { %v730_v4 = vpack.c.bf16 %v1020_v3, %v1020_v3 }
 0x113   : > { %907 = vmatmul.msk.bf16.gmra.mxu1 %vm481_vm3, %v728_v46 }
 0x123   : > { %908 = vmatmul.msk.bf16.gmra.mxu1 %vm481_vm3, %v729_v1 }
 0x133   : > { %909 = vmatmul.msk.bf16.gmra.mxu1 %vm481_vm3, %v730_v4 }
 0x180   : > { %v768_v23 = vpop.f32.mrf.mxu1 }
 0x181   : > { %788 = vst.msk [vmem:[%s219_s12] sm:$0xff] %vm787_vm5, %v768_v23 }
 0x188   : > { %v770_v49 = vpop.f32.mrf.mxu1 }
 0x189   : > { %789 = vst.msk [vmem:[%s219_s12 + $0x8] sm:$0xff] %vm787_vm5, %v770_v49 }
 0x190   : > { %v773_v6 = vpop.f32.mrf.mxu1 }
 0x191   : > { %790 = vst.msk [vmem:[%s219_s12 + $0x10] sm:$0xff] %vm787_vm5, %v773_v6 }
 0x198   : > { %v775_v60 = vpop.f32.mrf.mxu1 }
 0x199   : > { %791 = vst.msk [vmem:[%s219_s12 + $0x18] sm:$0xff] %vm787_vm5, %v775_v60 }
 0x1a0   : > { %v778_v8 = vpop.f32.mrf.mxu1 }
 0x1a1   : > { %792 = vst.msk [vmem:[%s219_s12 + $0x20] sm:$0xff] %vm787_vm5, %v778_v8 }
 0x1a8   : > { %v780_v10 = vpop.f32.mrf.mxu1 }
 0x1a9   : > { %793 = vst.msk [vmem:[%s219_s12 + $0x28] sm:$0xff] %vm787_vm5, %v780_v10 }
 0x1b0   : > { %v783_v11 = vpop.f32.mrf.mxu1 }
 0x1b1   : > { %794 = vst.msk [vmem:[%s219_s12 + $0x30] sm:$0xff] %vm787_vm5, %v783_v11 }
 0x1b8   : > { %v785_v14 = vpop.f32.mrf.mxu1 }
 0x1b9 PF: > { %s14_s17 = sadd.s32 1, %s1043_s17   ;;  %s1339_s15 = smov %s1039_s16 }
 0x1ba   : > { %p11_p5 = scmp.ge.s32.totalorder %s14_s17, 4   ;;  %s1340_s16 = smov %s1342_s18 }
 0x1bc   :  { %13 = sbr.rel (!%p11_p5) target bundleno = 2 (0x2), region = 72 }

</bundles_post_ra>
